<compile_context>
chip_gen: v5e
topology: v5e:2x2
jax: 0.10.0
libtpu: 0.0.40
codegen_flags: <defaults>
</compile_context>

<pallas_src>
import jax
import jax.numpy as jnp
from jax.experimental import pallas as pl
from jax.experimental.pallas import tpu as pltpu

IN_FEATURES = 2000
OUT_FEATURES = 1


def _round_up(n: int, m: int) -> int:
    return ((n + m - 1) // m) * m


def _logistic_kernel(x_ref, w_ref, b_ref, o_ref):
    # x_ref: [TB, K] VMEM (streamed)      w_ref: [1, K] VMEM (resident)
    # b_ref: [1, 1] SMEM scalar           o_ref: [1, 1, TB] VMEM (lane-dense)
    x = x_ref[...]
    w = w_ref[...]                              # broadcasts over the TB sublanes
    z = jnp.sum(x * w, axis=-1)                 # VPU multiply + XLU lane reduce -> [TB]
    y = jax.nn.sigmoid(z + b_ref[0, 0])         # scalar bias from SMEM, EUP sigmoid
    o_ref[...] = y.reshape(1, 1, -1).astype(o_ref.dtype)   # unmasked lane-dense store


def epsilon_logistic_forward(x, w, b, *, tb=1024, vmem_limit_bytes=None):
    """y = sigmoid(x @ w.T + b).

    x: [B, 2000] f32, w: [1, 2000] f32 (PyTorch Linear weight layout),
    b: [1] (or scalar) f32.  Returns [B, 1] f32.

    tb defaults to 1024 rows (good for v6e/v7x); pass tb=512 to stay inside
    v5e's 16 MiB default scoped VMEM without raising the limit.
    """
    B, K = x.shape
    assert K == IN_FEATURES
    assert w.shape == (OUT_FEATURES, IN_FEATURES)

    if x.dtype != jnp.float32:
        x = x.astype(jnp.float32)
    w2 = jnp.asarray(w, jnp.float32).reshape(1, IN_FEATURES)
    b_s = jnp.asarray(b, jnp.float32).reshape(1, 1)

    # Batch tile: multiple of 8 sublanes, no larger than needed.
    tb_eff = max(8, min(int(tb), _round_up(B, 8)))
    tb_eff = _round_up(tb_eff, 8)
    # Keep >= 2 grid steps when the batch allows (v7x has 2 TensorCores; the
    # "parallel" batch axis only helps if both cores get a tile).
    if B >= 16:
        tb_eff = min(tb_eff, max(8, _round_up(pl.cdiv(B, 2), 8)))

    num_tiles = pl.cdiv(B, tb_eff)

    if vmem_limit_bytes is None:
        # Double-buffered x tiles + resident weight + headroom.  Capped at
        # 48 MiB: safe on every generation (physical VMEM >= 64 MiB per TC).
        need = 2 * tb_eff * IN_FEATURES * 4 + (8 << 20)
        vmem_limit_bytes = int(min(max(need, 32 << 20), 48 << 20))

    out = pl.pallas_call(
        _logistic_kernel,
        out_shape=jax.ShapeDtypeStruct((num_tiles, 1, tb_eff), jnp.float32),
        grid_spec=pltpu.PrefetchScalarGridSpec(
            num_scalar_prefetch=0,
            grid=(num_tiles,),
            in_specs=[
                # Stream x directly from HBM, full-extent K (no padded copy).
                pl.BlockSpec((tb_eff, IN_FEATURES), lambda i: (i, 0)),
                # Weight: constant index_map -> fetched once, stays VMEM-resident.
                pl.BlockSpec((1, IN_FEATURES), lambda i: (0, 0)),
                # Bias: scalar in SMEM.
                pl.BlockSpec(memory_space=pltpu.MemorySpace.SMEM),
            ],
            # Lane-dense output: one [1, 1, tb] row per grid step.
            out_specs=pl.BlockSpec((1, 1, tb_eff), lambda i: (i, 0, 0)),
        ),
        compiler_params=pltpu.CompilerParams(
            dimension_semantics=("parallel",),
            vmem_limit_bytes=vmem_limit_bytes,
        ),
    )(x, w2, b_s)

    # (num_tiles, 1, tb) row-major == batch order; drop the padded tail rows.
    return out.reshape(num_tiles * tb_eff, OUT_FEATURES)[:B]


def init_params(key):
    # Mimic torch.nn.Linear default init: U(-1/sqrt(fan_in), 1/sqrt(fan_in)).
    kw, kb = jax.random.split(key)
    bound = 1.0 / jnp.sqrt(jnp.float32(IN_FEATURES))
    w = jax.random.uniform(
        kw, (OUT_FEATURES, IN_FEATURES), jnp.float32, -bound, bound
    )
    b = jax.random.uniform(kb, (OUT_FEATURES,), jnp.float32, -bound, bound)
    return w, b


if __name__ == "__main__":
    key = jax.random.PRNGKey(0)
    k_x, k_p = jax.random.split(key)

    # Small batch that is NOT a multiple of the tile -> exercises the
    # multi-tile path and the partial remainder block.
    batch = 20
    x = jax.random.normal(k_x, (batch, IN_FEATURES), jnp.float32)
    w, b = init_params(k_p)

    y = epsilon_logistic_forward(x, w, b)
    jax.block_until_ready(y)

    # Pure-elementwise f32 reference (avoids TPU default matmul precision).
    y_ref = jax.nn.sigmoid(
        jnp.sum(x * w.reshape(1, IN_FEATURES), axis=-1, keepdims=True) + b
    )
    assert y.shape == (batch, OUT_FEATURES)
    assert jnp.allclose(y, y_ref, atol=2e-5, rtol=1e-4), (
        float(jnp.max(jnp.abs(y - y_ref)))
    )

    print("KERNEL_OK")
</pallas_src>

<mosaic_0001>
module attributes {stable_mosaic.version = 11 : i64} {
  func.func @_logistic_kernel(%arg0: i32, %arg1: memref<16x2000xf32, #tpu.memory_space<vmem>>, %arg2: memref<1x2000xf32, #tpu.memory_space<vmem>>, %arg3: memref<1x1xf32, #tpu.memory_space<smem>>, %arg4: memref<1x1x16xf32, #tpu.memory_space<vmem>>) attributes {dimension_semantics = [#tpu.dimension_semantics<parallel>], iteration_bounds = array<i64: 2>, scalar_prefetch = 0 : i64, scratch_operands = 0 : i64, tpu.core_type = #tpu.core_type<tc>, window_params = [{transform_indices = @transform_0, window_bounds = array<i64: 16, 2000>}, {pipeline_mode = #tpu.pipeline_mode<synchronous>, transform_indices = @transform_1, window_bounds = array<i64: 1, 2000>}, {transform_indices = @transform_2, window_bounds = array<i64: 1, 1>}, {transform_indices = @transform_3, window_bounds = array<i64: 1, 1, 16>}]} {
    %c0 = arith.constant 0 : index
    %c0_0 = arith.constant 0 : index
    %0 = vector.load %arg1[%c0, %c0_0] : memref<16x2000xf32, #tpu.memory_space<vmem>>, vector<16x2000xf32>
    %c0_1 = arith.constant 0 : index
    %c0_2 = arith.constant 0 : index
    %1 = vector.load %arg2[%c0_1, %c0_2] : memref<1x2000xf32, #tpu.memory_space<vmem>>, vector<1x2000xf32>
    %2 = vector.broadcast %1 : vector<1x2000xf32> to vector<16x2000xf32>
    %3 = arith.mulf %0, %2 : vector<16x2000xf32>
    %cst = arith.constant dense<0.000000e+00> : vector<16xf32>
    %4 = vector.multi_reduction <add>, %3, %cst [1] : vector<16x2000xf32> to vector<16xf32>
    %c0_3 = arith.constant 0 : index
    %c0_4 = arith.constant 0 : index
    %5 = memref.load %arg3[%c0_3, %c0_4] : memref<1x1xf32, #tpu.memory_space<smem>>
    %6 = vector.broadcast %5 : f32 to vector<16xf32>
    %7 = arith.addf %4, %6 : vector<16xf32>
    %8 = arith.negf %7 : vector<16xf32>
    %9 = math.exp %8 : vector<16xf32>
    %cst_5 = arith.constant 1.000000e+00 : f32
    %10 = vector.broadcast %cst_5 : f32 to vector<16xf32>
    %11 = arith.addf %10, %9 : vector<16xf32>
    %12 = arith.divf %10, %11 : vector<16xf32>
    %13 = vector.shape_cast %12 : vector<16xf32> to vector<1x1x16xf32>
    %c0_6 = arith.constant 0 : index
    %c0_7 = arith.constant 0 : index
    %c0_8 = arith.constant 0 : index
    %14 = vector.load %arg4[%c0_6, %c0_7, %c0_8] : memref<1x1x16xf32, #tpu.memory_space<vmem>>, vector<1x1x16xf32>
    tpu.vector_store %arg4[%c0_6, %c0_7, %c0_8], %13 {strides = array<i32>} : memref<1x1x16xf32, #tpu.memory_space<vmem>>, vector<1x1x16xf32>,
    return
  }
  func.func @transform_0(%arg0: i32) -> (i32, i32) {
    %c0_i32 = arith.constant 0 : i32
    %c0_i32_0 = arith.constant 0 : i32
    return %arg0, %c0_i32 : i32, i32
  }
  func.func @transform_1(%arg0: i32) -> (i32, i32) {
    %c0_i32 = arith.constant 0 : i32
    %c0_i32_0 = arith.constant 0 : i32
    %c0_i32_1 = arith.constant 0 : i32
    return %c0_i32, %c0_i32_0 : i32, i32
  }
  func.func @transform_2(%arg0: i32) -> (i32, i32) {
    %c0_i32 = arith.constant 0 : i32
    %c0_i32_0 = arith.constant 0 : i32
    %c0_i32_1 = arith.constant 0 : i32
    return %c0_i32, %c0_i32_0 : i32, i32
  }
  func.func @transform_3(%arg0: i32) -> (i32, i32, i32) {
    %c0_i32 = arith.constant 0 : i32
    %c0_i32_0 = arith.constant 0 : i32
    %c0_i32_1 = arith.constant 0 : i32
    return %arg0, %c0_i32, %c0_i32_0 : i32, i32, i32
  }
}

</mosaic_0001>

<bundles_post_ra>
// kernel: tpu_custom_call.1
= control target key start
LH: loop header
LB: loop body
LE: loop exit
PB: predicated region body
PF: predicated region fallthrough
CT: control target
= control target key end

     0   :  { %s985_s0 = inlined_call_operand.hbm [shape: f32[20,2000], index: 0, kind: input, shape index: {}]   ;;  %s986_s1 = inlined_call_operand.hbm [shape: f32[1,2000], index: 1, kind: input, shape index: {}]   ;;  %s987_s2 = inlined_call_operand.<no memory space> [shape: f32[1,1], index: 2, kind: input, shape index: {}]   ;;  %s988_s3 = inlined_call_operand.hbm [shape: f32[2,1,16], index: 3, kind: output, shape index: {}]  }
   0x1   :  { %8 = sst [smem:[#allocation2]] %s987_s2 }
   0x2   :  { %9 = vsyncpa [#allocation4], 0 }
   0x3   :  { %11 = vsyncpa [#allocation4 + $0x1], 0 }
   0x4   :  { %12 = vsyncpa [#allocation7], 0 }
   0x5   :  { %13 = vsyncpa [#allocation5], 0 }
   0x6   :  { %15 = vsyncpa [#allocation5 + $0x1], 0  ;;  %s753_s14 = smov 0   ;;  %s755_s15 = smov 0  }
   0x7   :  { %s757_s16 = smov 0   ;;  %s759_s17 = smov 0  }
   0x8 LB: > { %s774_s2 = sadd.s32 4294967295, %s724_s17   ;;  %s501_s18 = sadd.s32 4294967294, %s724_s17   ;;  %s724_s17 = sphi %s759_s17, %s1006_s17   ;;  %s720_s16 = sphi %s757_s16, %s1005_s16   ;;  %s716_s15 = sphi %s755_s15, %s1004_s15   ;;  %s712_s14 = sphi %s753_s14, %s1003_s14  }
   0x9   : > { %s778_s19 = sadd.s32 1, %s724_s17   ;;  %s28_s20 = sadd.s32 1, %s720_s16 }
   0xa   : > { %s25_s21 = ssub.s32 %s724_s17, %s778_s19  ;;  %p35_p0 = scmp.ne.s32.totalorder %s720_s16, %s716_s15 }
   0xb   : > { %p26_p1 = scmp.eq.s32.totalorder %s25_s21, 0  ;;  %p36_p2 = scmp.eq.s32.totalorder %s724_s17, 0 }
   0xc   : > { %p41_p3 = scmp.ne.s32.totalorder %s716_s15, %s712_s14  ;;  %p990_p4 = scmp.eq.s32.totalorder %s774_s2, 0 }
   0xd   : > { %s790_s22 = scalar_select %p26_p1, %s720_s16, %s28_s20  }
   0xe   : > { %p792_p5 = por %p36_p2, %p35_p0  ;;  %p798_p6 = por %p990_p4, %p41_p3 }
   0xf   : > { %p107_p7 = scmp.eq.s32.totalorder %s774_s2, 1  ;;  %p113_p8 = scmp.eq.s32.totalorder %s501_s18, 1 }
  0x10   : > { %p502_p9 = scmp.ge.s32.totalorder %s724_s17, 1  ;;  %p120_p10 = scmp.lt.s32.totalorder %s724_s17, 3 }
  0x11   : > { %p805_p11 = por %p107_p7, %p35_p0  ;;  %p809_p12 = por %p113_p8, %p41_p3 }
  0x12   : > { %p813_p13 = pnand %p502_p9, %p120_p10  ;;  %s132_s30 = sshll.u32 %s986_s1, 4  ;;  %s133_s30 = int_to_ptr.hbm [resolvable:$true] %s132_s30 }
  0x13   : > { %s994_s26 = scalar_select %p809_p12, 1, 0 }
  0x14   : > { %p531_p1 = pneg %p813_p13  ;;  %s726_s4 = smov [#allocation6]  }
  0x15   : > { %s134_s5 = sshll.u32 %s726_s4, 4  ;;  %p989_p2 = scmp.ge.s32.totalorder %s724_s17, 2  ;;  %s135_s5 = int_to_ptr.vmem [resolvable:$true] %s134_s5 }
  0x16   : > { %p532_p0 = pnand %p531_p1, %p990_p4 }
  0x17   : > { %144 = sbr.rel (%p989_p2) target bundleno = 64 (0x40), region = 24 }
  0x18   : > { %534 = dma.hbm_to_vmem [thread:$0]  (!%p532_p0), %s133_s30, 256, %s135_s5, [#allocation7]  }
  0x1c   : > { %147 = sbr.rel (!%p792_p5) target bundleno = 64 (0x40), region = 28  ;;  %s148_s6 = sand.u32 (%p792_p5), 1, %s720_s16  }
  0x1d   : > { %s506_s7 = sshll.u32 (%p792_p5), %s724_s17, 1  ;;  %s505_s8 = sshll.u32 (%p792_p5), %s148_s6, 8 }
  0x1e   : > { %s154_s9 = ssub.s32 (%p792_p5), 3, %s506_s7  ;;  %s834_s13 = scalar_lea.sflag (%p792_p5), [#allocation4], %s148_s6 }
  0x1f   : > { %p155_p3 = scmp.lt.s32.totalorder (%p792_p5), %s154_s9, 2  ;;  %s152_s18 = scalar_lea.vmem (%p792_p5), [#allocation3], %s505_s8 }
  0x21   : > { %s1008_s9 = smov (!%p155_p3, %s154_s9), 2 }
  0x22   : > { %s521_s10 = sshll.u32 %s1008_s9, 7 }
  0x23   : > { %s159_s11 = ssub.s32 256, %s521_s10 }
  0x24   : > { %s160_s12 = sshll.u32 %s159_s11, 4 }
  0x25   : > { %161 = vsyncadd %s834_s13, %s160_s12  ;;  %p837_p5 = scmp.ne.s32.totalorder %s521_s10, 0  ;;  %s523_s21 = sshll.u32 %s724_s17, 8 }
  0x26   : > { %s165_s29 = scalar_lea.hbm %s985_s0, %s523_s21  ;;  %s845_s30 = sshll.u32 %s152_s18, 4  ;;  %s170_s30 = int_to_ptr.vmem [resolvable:$true] %s845_s30 }
  0x27   : > { %s167_s4 = sshll.u32 %s165_s29, 4  ;;  %s513_s5 = sshll.u32 %s1008_s9, 11  ;;  %s848_s4 = int_to_ptr.hbm [resolvable:$true] %s167_s4 }
  0x28   : > { %s615_s6 = sshra.s32 %s848_s4, 4  ;;  %s617_s7 = sshrl.u32 %s513_s5, 4  ;;  %s616_s6 = int_to_ptr.hbm [resolvable:$true] %s615_s6 }
  0x29   : > { %s622_s8 = scalar_lea.hbm %s616_s6, %s617_s7  ;;  %s626_s12 = scalar_lea.hbm %s985_s0, 384 }
  0x2a   : > { %p623_p7 = scmp.ne.s32.totalorder %s616_s6, %s622_s8  ;;  %p627_p10 = scmp.lt.s32.totalorder %s616_s6, %s985_s0 }
  0x2b   : > { %p628_p1 = scmp.lt.s32.totalorder %s626_s12, %s622_s8 }
  0x2c   : > { %p624_p8 = pnand %p623_p7, %p837_p5 }
  0x2d   : > { %p629_p0 = por %p628_p1, %p627_p10 }
  0x2e   : > { %p625_p9 = pneg %p624_p8 }
  0x30   : > { %p630_p3 = pnand %p629_p0, %p625_p9 }
  0x32   : > { %633 = shalt.err (!%p630_p3)
}
  0x33   : > { %s634_s23 = sshra.s32 %s170_s30, 4  ;;  %s727_s29 = smov [#allocation3]   ;;  %s635_s23 = int_to_ptr.vmem [resolvable:$true] %s634_s23 }
  0x34   : > { %s641_s28 = scalar_lea.vmem %s635_s23, %s617_s7  ;;  %s645_s10 = scalar_lea.vmem %s727_s29, 512 }
  0x35   : > { %p642_p7 = scmp.ne.s32.totalorder %s635_s23, %s641_s28  ;;  %p647_p4 = scmp.lt.s32.totalorder %s645_s10, %s641_s28 }
  0x37   : > { %p643_p8 = pnand %p642_p7, %p837_p5 }
  0x39   : > { %p644_p2 = pneg %p643_p8 }
  0x3b   : > { %p649_p12 = pnand %p647_p4, %p644_p2 }
  0x3d   : > { %652 = shalt.err (!%p649_p12)
}
  0x3e   : > { %s728_s6 = smov 2048   ;;  %s729_s8 = smov 128  }
  0x3f   : > { %175 = dma.hbm_to_vmem [thread:$0]  (%p837_p5), %s848_s4, %s513_s5, %s170_s30, %s834_s13, %s728_s6, %s728_s6, %s729_s8  }
  0x40 PF: > { %181 = sbr.rel (%p813_p13) target bundleno = 268 (0x10c), region = 32  ;;  %s877_s7 = sand.u32 (!%p813_p13), 1, %s716_s15  }
  0x41   : > { %s515_s11 = sshll.u32 (!%p813_p13), %s877_s7, 8  ;;  %s184_s12 = scalar_lea.sflag (!%p813_p13), [#allocation4], %s877_s7 }
  0x42   : > { %s881_s18 = scalar_lea.vmem (!%p813_p13), [#allocation3], %s515_s11 }
  0x45   : > { %699 = dma.done.wait (%p798_p6), %s184_s12, 4096  }
  0x46   : > { %701 = vsyncadd (%p798_p6), %s184_s12, 4294963200  ;;  %p997_p4 = scmp.eq.s32.totalorder %s774_s2, 0 }
  0x48   : > { %703 = dma.done.wait (%p997_p4), [#allocation7], 256   ;;  %p998_p12 = pmov %p997_p4 }
  0x49   : > { %v891_v0 = vld [vmem:[#allocation6] sm:$0xff]  ;;  %v222_v4 = vld [vmem:[%s881_s18 + $0x8] sm:$0xff]  ;;  %v223_v6 = vld [vmem:[%s881_s18 + $0x10] sm:$0xff]  ;;  %vm335_vm0 = vcmask 654336   ;;  %s358_s24 = sld [smem:[#allocation2]]  ;;  %s421_s13 = scalar_lea.hbm %s988_s3, %s774_s2  ;;  %vm407_vm9 = vcmask 130112  }
  0x4a   : > { %705 = vsyncadd (%p998_p12), [#allocation7], 4294967040  ;;  %v257_v1 = vperm.slane %v891_v0, 0  ;;  %v258_v2 = vperm.slane %v891_v0, 1  ;;  %v221_v3 = vld [vmem:[%s881_s18] sm:$0xff]  ;;  %v259_v5 = vperm.slane %v891_v0, 2 }
  0x4b   : > { %v260_v7 = vperm.slane %v891_v0, 3  ;;  %v224_v10 = vld [vmem:[%s881_s18 + $0x18] sm:$0xff]  ;;  %v261_v11 = vperm.slane %v891_v0, 4  ;;  %v237_v13 = vld [vmem:[%s881_s18 + $0x80] sm:$0xff]  ;;  %v238_v14 = vld [vmem:[%s881_s18 + $0x88] sm:$0xff]  ;;  %v262_v16 = vperm.slane %v891_v0, 5 }
  0x4c   : > { %v289_v8 = vmul.f32 %v257_v1, %v221_v3  ;;  %v290_v9 = vmul.f32 %v258_v2, %v222_v4  ;;  %v291_v12 = vmul.f32 %v259_v5, %v223_v6  ;;  %v225_v15 = vld [vmem:[%s881_s18 + $0x20] sm:$0xff]  ;;  %v239_v19 = vld [vmem:[%s881_s18 + $0x90] sm:$0xff]  ;;  %v226_v20 = vld [vmem:[%s881_s18 + $0x28] sm:$0xff]  ;;  %v305_v21 = vmul.f32 %v257_v1, %v237_v13  ;;  %s214_s20 = scalar_lea.vmem [#allocation8], %s877_s7  ;;  %s425_s4 = sshll.u32 %s421_s13, 4  ;;  %s426_s4 = int_to_ptr.hbm [resolvable:$true] %s425_s4 }
  0x4d   : > { %v292_v17 = vmul.f32 %v260_v7, %v224_v10  ;;  %v306_v22 = vmul.f32 %v258_v2, %v238_v14  ;;  %v263_v23 = vperm.slane %v891_v0, 6  ;;  %v293_v24 = vmul.f32 %v261_v11, %v225_v15  ;;  %v240_v26 = vld [vmem:[%s881_s18 + $0x98] sm:$0xff]  ;;  %v227_v27 = vld [vmem:[%s881_s18 + $0x30] sm:$0xff]  ;;  %v911_v28 = vld [vmem:[#allocation6 + $0x8] sm:$0xff]  ;;  %s423_s30 = sshll.u32 %s214_s20, 4  ;;  %s413_s2 = scalar_lea.sflag [#allocation5], %s877_s7  ;;  %s424_s30 = int_to_ptr.vmem [resolvable:$true] %s423_s30 }
  0x4e   : > { %v321_v18 = vadd.f32 %v290_v9, %v289_v8  ;;  %v307_v29 = vmul.f32 %v259_v5, %v239_v19  ;;  %v264_v30 = vperm.slane %v891_v0, 7  ;;  %v294_v31 = vmul.f32 %v262_v16, %v226_v20  ;;  %v241_v33 = vld [vmem:[%s881_s18 + $0xa0] sm:$0xff]  ;;  %v228_v34 = vld [vmem:[%s881_s18 + $0x38] sm:$0xff]  ;;  %v242_v40 = vld [vmem:[%s881_s18 + $0xa8] sm:$0xff]  ;;  %s668_s5 = sshra.s32 %s426_s4, 4  ;;  %s674_s29 = scalar_lea.hbm %s988_s3, 2  ;;  %s669_s5 = int_to_ptr.hbm [resolvable:$true] %s668_s5 }
  0x4f   : > { %v308_v35 = vmul.f32 %v260_v7, %v240_v26  ;;  %v340_v36 = vadd.f32 %v306_v22, %v305_v21  ;;  %v265_v37 = vperm.slane %v911_v28, 0  ;;  %v295_v38 = vmul.f32 %v263_v23, %v227_v27  ;;  %v229_v41 = vld [vmem:[%s881_s18 + $0x40] sm:$0xff]  ;;  %v243_v47 = vld [vmem:[%s881_s18 + $0xb0] sm:$0xff]  ;;  %v230_v48 = vld [vmem:[%s881_s18 + $0x48] sm:$0xff]  ;;  %s670_s21 = scalar_lea.hbm %s669_s5, 1  ;;  %p675_p5 = scmp.lt.s32.totalorder %s669_s5, %s988_s3 }
  0x50   : > { %v322_v25 = vadd.f32 %v321_v18, %v291_v12  ;;  %v309_v42 = vmul.f32 %v261_v11, %v241_v33  ;;  %v266_v44 = vperm.slane %v911_v28, 1  ;;  %v296_v45 = vmul.f32 %v264_v30, %v228_v34  ;;  %v244_v54 = vld [vmem:[%s881_s18 + $0xb8] sm:$0xff]  ;;  %v231_v55 = vld [vmem:[%s881_s18 + $0x50] sm:$0xff]  ;;  %v245_v61 = vld [vmem:[%s881_s18 + $0xc0] sm:$0xff]  ;;  %p671_p6 = scmp.ne.s32.totalorder %s669_s5, %s670_s21  ;;  %p676_p9 = scmp.lt.s32.totalorder %s674_s29, %s670_s21 }
  0x51   : > { %v341_v43 = vadd.f32 %v340_v36, %v307_v29  ;;  %v310_v49 = vmul.f32 %v262_v16, %v242_v40  ;;  %v267_v51 = vperm.slane %v911_v28, 2  ;;  %v297_v52 = vmul.f32 %v265_v37, %v229_v41  ;;  %v232_v62 = vld [vmem:[%s881_s18 + $0x58] sm:$0xff]  ;;  %v246_v4 = vld [vmem:[%s881_s18 + $0xc8] sm:$0xff]  ;;  %v233_v5 = vld [vmem:[%s881_s18 + $0x60] sm:$0xff] }
  0x52   : > { %v323_v32 = vadd.f32 %v322_v25, %v292_v17  ;;  %v311_v56 = vmul.f32 %v263_v23, %v243_v47  ;;  %v268_v58 = vperm.slane %v911_v28, 3  ;;  %v298_v59 = vmul.f32 %v266_v44, %v230_v48  ;;  %v247_v11 = vld [vmem:[%s881_s18 + $0xd0] sm:$0xff]  ;;  %v234_v12 = vld [vmem:[%s881_s18 + $0x68] sm:$0xff]  ;;  %v236_v16 = vld [vmem:[%s881_s18 + $0x78] sm:$0xff]  ;;  %p672_p13 = pnand %p671_p6, %p805_p11  ;;  %p677_p10 = por %p676_p9, %p675_p5 }
  0x53   : > { %v342_v50 = vadd.f32 %v341_v43, %v308_v35  ;;  %v312_v63 = vmul.f32 %v264_v30, %v244_v54  ;;  %v269_v1 = vperm.slane %v911_v28, 4  ;;  %v299_v2 = vmul.f32 %v267_v51, %v231_v55  ;;  %v248_v20 = vld [vmem:[%s881_s18 + $0xd8] sm:$0xff]  ;;  %v235_v21 = vld [vmem:[%s881_s18 + $0x70] sm:$0xff]  ;;  %v249_v26 = vld [vmem:[%s881_s18 + $0xe0] sm:$0xff] }
  0x54   : > { %v324_v39 = vadd.f32 %v323_v32, %v293_v24  ;;  %v313_v6 = vmul.f32 %v265_v37, %v245_v61  ;;  %v270_v8 = vperm.slane %v911_v28, 5  ;;  %v300_v9 = vmul.f32 %v268_v58, %v232_v62  ;;  %v250_v33 = vld [vmem:[%s881_s18 + $0xe8] sm:$0xff]  ;;  %v251_v36 = vld [vmem:[%s881_s18 + $0xf0] sm:$0xff]  ;;  %v252_v37 = vld [vmem:[%s881_s18 + $0xf8] sm:$0xff]  ;;  %p673_p2 = pneg %p672_p13 }
  0x55   : > { %v343_v57 = vadd.f32 %v342_v50, %v309_v42  ;;  %v272_v13 = vperm.slane %v911_v28, 7  ;;  %v314_v14 = vmul.f32 %v266_v44, %v246_v4  ;;  %v271_v17 = vperm.slane %v911_v28, 6 }
  0x56   : > { %v325_v46 = vadd.f32 %v324_v39, %v294_v31  ;;  %v301_v18 = vmul.f32 %v269_v1, %v233_v5  ;;  %v315_v22 = vmul.f32 %v267_v51, %v247_v11  ;;  %v302_v24 = vmul.f32 %v270_v8, %v234_v12  ;;  %p678_p1 = pnand %p677_p10, %p673_p2 }
  0x57   : > { %v344_v0 = vadd.f32 %v343_v57, %v310_v49  ;;  %v304_v27 = vmul.f32 %v272_v13, %v236_v16  ;;  %v316_v29 = vmul.f32 %v268_v58, %v248_v20  ;;  %v303_v31 = vmul.f32 %v271_v17, %v235_v21 }
  0x58   : > { %v326_v53 = vadd.f32 %v325_v46, %v295_v38  ;;  %v317_v28 = vmul.f32 %v269_v1, %v249_v26  ;;  %v318_v39 = vmul.f32 %v270_v8, %v250_v33  ;;  %v319_v42 = vmul.f32 %v271_v17, %v251_v36 }
  0x59   : > { %v345_v7 = vadd.f32 %v344_v0, %v311_v56  ;;  %v336_v38 = vsel %vm335_vm0, %v304_v27, 0.0  ;;  %v320_v43 = vmul.f32 %v272_v13, %v252_v37  ;;  %v359_v50 = vstv %s358_s24 }
  0x5a   : > { %v327_v60 = vadd.f32 %v326_v53, %v296_v45  ;;  %vm410_vm10 = vcmask 122880  }
  0x5b   : > { %v346_v15 = vadd.f32 %v345_v7, %v312_v63  ;;  %v354_v48 = vsel %vm335_vm0, %v320_v43, 0.0 }
  0x5c   : > { %v328_v3 = vadd.f32 %v327_v60, %v297_v52 }
  0x5d   : > { %v347_v23 = vadd.f32 %v346_v15, %v313_v6 }
  0x5e   : > { %v329_v10 = vadd.f32 %v328_v3, %v298_v59 }
  0x5f   : > { %v348_v30 = vadd.f32 %v347_v23, %v314_v14 }
  0x60   : > { %v330_v19 = vadd.f32 %v329_v10, %v299_v2  ;;  %v402_v2 = vlaneseq }
  0x61   : > { %v349_v34 = vadd.f32 %v348_v30, %v315_v22 }
  0x62   : > { %v331_v25 = vadd.f32 %v330_v19, %v300_v9  ;;  %v403_v10 = vand.u32 127, %v402_v2 }
  0x63   : > { %v350_v40 = vadd.f32 %v349_v34, %v316_v29 }
  0x64   : > { %v332_v32 = vadd.f32 %v331_v25, %v301_v18  ;;  %v405_v16 = vadd.s32 4294967288, %v403_v10 }
  0x65   : > { %v351_v44 = vadd.f32 %v350_v40, %v317_v28 }
  0x66   : > { %v333_v35 = vadd.f32 %v332_v32, %v302_v24 }
  0x67   : > { %v352_v46 = vadd.f32 %v351_v44, %v318_v39 }
  0x68   : > { %v334_v41 = vadd.f32 %v333_v35, %v303_v31 }
  0x69   : > { %v353_v47 = vadd.f32 %v352_v46, %v319_v42 }
  0x6a   : > { %v337_v45 = vadd.f32 %v336_v38, %v334_v41 }
  0x6b   : > { %v355_v49 = vadd.f32 %v354_v48, %v353_v47 }
  0x6c   : > { %338 = vadd.xlane.f32.xlu0 %v337_v45 }
  0x74   : > { %356 = vadd.xlane.f32.xlu0 %v355_v49 }
  0xdf   : > { %v339_v51 = vpop.xlane.xlu0 %338 }
  0xe0   : > { %v360_v52 = vadd.f32 %v359_v50, %v339_v51 }
  0xe2   : > { %v517_v53 = vmul.f32 -1.442695, %v360_v52 }
  0xe4   : > { %577 = vpow2.f32 %v517_v53 }
  0xe7   : > { %v357_v54 = vpop.xlane.xlu0 %356 }
  0xe8   : > { %v361_v55 = vadd.f32 %v359_v50, %v357_v54 }
  0xea   : > { %v578_v56 = vpop.eup %577  ;;  %v518_v57 = vmul.f32 -1.442695, %v361_v55 }
  0xeb   : > { %v368_v58 = vadd.f32 1.0, %v578_v56 }
  0xec   : > { %579 = vpow2.f32 %v518_v57 }
  0xed   : > { %581 = vrcp.f32 %v368_v58  ;;  %v381_v5 = vand.u32 2147483648, %v368_v58  ;;  %vm375_vm2 = vweird.f32 %v368_v58  ;;  %v379_v6 = vand.u32 2147483647, %v368_v58 }
  0xef   : > { %v382_v14 = vor.u32 1.1754944e-38, %v381_v5  ;;  %vm380_vm5 = vcmp.eq.f32.partialorder %v379_v6, 8.507059e+37 }
  0xf2   : > { %v580_v59 = vpop.eup %579 }
  0xf3   : > { %v582_v60 = vpop.eup %581  ;;  %v369_v61 = vadd.f32 1.0, %v580_v59 }
  0xf4   : > { %v371_v62 = vmul.f32 %v582_v60, %v368_v58  ;;  %vm376_vm1 = vweird.f32 %v582_v60 }
  0xf5   : > { %583 = vrcp.f32 %v369_v61  ;;  %vm945_vm3 = vmor %vm375_vm2, %vm376_vm1  ;;  %v396_v9 = vand.u32 2147483648, %v369_v61  ;;  %v394_v12 = vand.u32 2147483647, %v369_v61  ;;  %vm390_vm6 = vweird.f32 %v369_v61 }
  0xf6   : > { %v372_v63 = vsub.f32 1.0, %v371_v62 }
  0xf7   : > { %v397_v17 = vor.u32 1.1754944e-38, %v396_v9  ;;  %vm395_vm8 = vcmp.eq.f32.partialorder %v394_v12, 8.507059e+37 }
  0xf8   : > { %v373_v0 = vmul.f32 %v582_v60, %v372_v63 }
  0xfa   : > { %v374_v3 = vadd.f32 %v582_v60, %v373_v0 }
  0xfb   : > { %v584_v1 = vpop.eup %583 }
  0xfc   : > { %v386_v4 = vmul.f32 %v584_v1, %v369_v61  ;;  %vm391_vm4 = vweird.f32 %v584_v1  ;;  %v378_v13 = vsel %vm945_vm3, %v582_v60, %v374_v3 }
  0xfd   : > { %vm392_vm7 = vmor %vm390_vm6, %vm391_vm4  ;;  %v383_v18 = vsel %vm380_vm5, %v382_v14, %v378_v13 }
  0xfe   : > { %v387_v7 = vsub.f32 1.0, %v386_v4  ;;  %v404_v21 = vperm.slane %v383_v18, %v403_v10 }
 0x100   : > { %v388_v11 = vmul.f32 %v584_v1, %v387_v7 }
 0x102   : > { %v389_v15 = vadd.f32 %v584_v1, %v388_v11 }
 0x104   : > { %v393_v19 = vsel %vm392_vm7, %v584_v1, %v389_v15 }
 0x105   : > { %v398_v20 = vsel %vm395_vm8, %v397_v17, %v393_v19 }
 0x106   : > { %v406_v22 = vperm.slane %v398_v20, %v405_v16 }
 0x108   : > { %v408_v23 = vsel %vm407_vm9, %v406_v22, %v404_v21 }
 0x109   : > { %411 = vst.msk [vmem:[%s214_s20] sm:$0x1] %vm410_vm10, %v408_v23 }
 0x10a   : > { %681 = shalt.err (!%p678_p1)
}
 0x10b   : > { %529 = dma.vmem_to_hbm [thread:$0]  (%p805_p11), %s424_s30, 16, %s426_s4, %s413_s2  }
 0x10c PF: > { %s437_s8 = sand.u32 1, %s712_s14   ;;  %p1001_p0 = scmp.ne.s32.totalorder %s994_s26, 0 }
 0x10d   : > { %p1002_p3 = scmp.ge.s32.totalorder %s724_s17, 2  ;;  %s438_s7 = scalar_lea.sflag [#allocation5], %s437_s8 }
 0x10f   : > { %p536_p7 = pnand %p1002_p3, %p1001_p0 }
 0x111   : > { %p537_p8 = pneg %p536_p7 }
 0x113   : > { %707 = dma.done.wait (%p537_p8), %s438_s7, 16  }
 0x114   : > { %709 = vsyncadd (%p537_p8), %s438_s7, 4294967280  ;;  %p18_p4 = scmp.ge.s32.totalorder %s778_s19, 4   ;;  %s1003_s14 = smov %s716_s15 }
 0x115   : > { %s1004_s15 = smov %s720_s16  ;;  %s1005_s16 = smov %s790_s22 }
 0x116   : > { %s1006_s17 = smov %s778_s19  ;;  %20 = sbr.rel (!%p18_p4) target bundleno = 8 (0x8), region = 81 }
 0x11b   :  { %443 = vsyncpa [#allocation4], 1 }
 0x11c   :  { %445 = vsyncpa [#allocation4 + $0x1], 1 }
 0x11d   :  { %446 = vsyncpa [#allocation7], 1 }
 0x11e   :  { %447 = vsyncpa [#allocation5], 1 }
 0x11f   :  { %449 = vsyncpa [#allocation5 + $0x1], 1 }

</bundles_post_ra>
